<compile_context>
chip_gen: v7x
topology: tpu7x:2x2x1
jax: 0.10.0
libtpu: 0.0.40
codegen_flags: <defaults>
</compile_context>

<pallas_src>
import jax
import jax.numpy as jnp
from jax import lax
from jax.experimental import pallas as pl
from jax.experimental.pallas import tpu as pltpu


def _round_up(x, m):
    return ((x + m - 1) // m) * m


def ner_fused_kernel(tok_ref, w1p_ref, w2_ref, b2_ref, o_ref):
    # tok_ref: (TM, 1)        int32 token ids for this tile (streamed)
    # w1p_ref: (V_pad, H_pad) fused table: emb @ w1 + b1   (resident)
    # w2_ref:  (H_pad, T_pad) output weight (transposed vs torch, resident)
    # b2_ref:  (1, T_pad)     output bias (resident)
    # o_ref:   (TM, T_pad)    logits tile
    tm = tok_ref.shape[0]
    v_pad = w1p_ref.shape[0]

    ids = tok_ref[...]                                        # (TM, 1) int32
    iota = lax.broadcasted_iota(jnp.int32, (tm, v_pad), 1)    # (TM, V_pad)
    onehot = (ids == iota).astype(jnp.float32)                # exact 0/1 values

    # Fused embedding gather + hidden layer in one MXU matmul: the one-hot
    # selects row `id` of (emb @ w1 + b1) exactly.
    h = jnp.dot(onehot, w1p_ref[...], preferred_element_type=jnp.float32)
    h = jnp.maximum(h, 0.0)                                   # ReLU (VPU)
    # dropout(0.3): identity at inference.
    out = jnp.dot(h, w2_ref[...], preferred_element_type=jnp.float32) + b2_ref[...]
    o_ref[...] = out.astype(o_ref.dtype)


def prepare_params(embedding, w1, b1, w2, b2):
    """One-time parameter prep (call once at init, NOT per forward step).

    Pads all feature dims to lane-dense multiples of 128 and fuses the first
    layer into W1' = emb @ w1 + b1 of shape (V_pad, H_pad).
    """
    V, E = embedding.shape
    H = w1.shape[1]
    T = w2.shape[1]
    V_pad = _round_up(V, 128)
    H_pad = _round_up(H, 128)
    T_pad = _round_up(T, 128)

    w1p = jnp.dot(embedding, w1, preferred_element_type=jnp.float32) + b1.reshape(1, H)
    w1p = jnp.pad(w1p, ((0, V_pad - V), (0, H_pad - H)))
    w2p = jnp.pad(w2, ((0, H_pad - H), (0, T_pad - T)))
    b2p = jnp.pad(b2.reshape(1, T), ((0, 0), (0, T_pad - T)))

    return {
        "w1p": w1p, "w2p": w2p, "b2p": b2p,
        "V": V, "T": T, "V_pad": V_pad, "H_pad": H_pad, "T_pad": T_pad,
    }


def _pallas_logits(tok, w1p, w2p, b2p, *, TM, num_tiles, M_pad,
                   V_pad, H_pad, T_pad, resident_mode):
    """Build and run the pallas_call. `resident_mode` controls buffering of the
    grid-invariant operands (pl.Buffered(1) halves their VMEM footprint)."""

    def resident_spec(shape):
        if resident_mode is None:
            return pl.BlockSpec(shape, lambda i: (0, 0))
        return pl.BlockSpec(shape, lambda i: (0, 0), pipeline_mode=resident_mode)

    # Explicit VMEM budget: residents (single- or double-buffered) + streamed
    # double-buffers + kernel temporaries, 1.5x headroom, capped at v7x's
    # 64 MiB physical VMEM per TensorCore.
    resident_bytes = (V_pad * H_pad + H_pad * T_pad + T_pad) * 4
    if resident_mode is None:
        resident_bytes *= 2
    stream_bytes = 2 * (TM * 128 * 4) + 2 * (TM * T_pad * 4)   # tok block (lane-padded) + out block
    temp_bytes = (TM * V_pad + TM * H_pad + TM * T_pad) * 4    # onehot / h / out temporaries
    vmem_limit = int(min(max(1.5 * (resident_bytes + stream_bytes + temp_bytes),
                             16 * 1024 * 1024),
                         64 * 1024 * 1024))

    cost = pl.CostEstimate(
        flops=2 * M_pad * (V_pad * H_pad + H_pad * T_pad),
        transcendentals=0,
        bytes_accessed=(M_pad * 4                               # token ids
                        + M_pad * T_pad * 4                     # logits
                        + (V_pad * H_pad + H_pad * T_pad + T_pad) * 4),  # params (once)
    )

    return pl.pallas_call(
        ner_fused_kernel,
        out_shape=jax.ShapeDtypeStruct((M_pad, T_pad), jnp.float32),
        grid_spec=pltpu.PrefetchScalarGridSpec(
            num_scalar_prefetch=0,
            grid=(num_tiles,),
            in_specs=[
                pl.BlockSpec((TM, 1), lambda i: (i, 0)),   # token ids (streamed)
                resident_spec((V_pad, H_pad)),             # fused emb@w1+b1 table
                resident_spec((H_pad, T_pad)),             # w2
                resident_spec((1, T_pad)),                 # b2
            ],
            out_specs=pl.BlockSpec((TM, T_pad), lambda i: (i, 0)),
        ),
        compiler_params=pltpu.CompilerParams(
            dimension_semantics=("parallel",),   # shard M tiles across TCs (v7x)
            vmem_limit_bytes=vmem_limit,
        ),
        cost_estimate=cost,
    )(tok, w1p, w2p, b2p)


def ner_forward(tokens, params):
    """tokens: (B, S) int -> logits (B, S, num_tags) float32."""
    B, S = tokens.shape
    V, T = params["V"], params["T"]
    V_pad, H_pad, T_pad = params["V_pad"], params["H_pad"], params["T_pad"]
    M = B * S

    # Tile the token axis; 512 rows/tile for large M (HBM-roofline sweet spot),
    # otherwise split into >= 2 tiles so "parallel" can use both v7x TCs.
    TM = 512
    if M <= TM:
        TM = max(8, _round_up(pl.cdiv(M, 2), 8))
    M_pad = _round_up(M, TM)
    num_tiles = M_pad // TM

    # Per-call token prep only (params were padded once in prepare_params).
    # Clamp ids like jnp.take does so dirty inputs can't produce an all-zero
    # one-hot row silently.
    tok = jnp.clip(tokens.reshape(M).astype(jnp.int32), 0, V - 1)
    tok = jnp.pad(tok, (0, M_pad - M)).reshape(M_pad, 1)

    call_kwargs = dict(TM=TM, num_tiles=num_tiles, M_pad=M_pad,
                       V_pad=V_pad, H_pad=H_pad, T_pad=T_pad)
    try:
        logits_pad = _pallas_logits(tok, params["w1p"], params["w2p"], params["b2p"],
                                    resident_mode=pl.Buffered(1), **call_kwargs)
    except Exception:
        # TODO(synk): drop this fallback once single-buffered residents
        # (pl.Buffered(1)) are guaranteed supported in the deployed JAX.
        logits_pad = _pallas_logits(tok, params["w1p"], params["w2p"], params["b2p"],
                                    resident_mode=None, **call_kwargs)

    return logits_pad[:M, :T].reshape(B, S, T)


def init_params(key, vocab_size, embedding_dim, hidden_dim, num_tags):
    """Deterministic init mirroring PyTorch defaults (shapes are what matter)."""
    k_emb, k_w1, k_b1, k_w2, k_b2 = jax.random.split(key, 5)

    # nn.Embedding: N(0, 1), padding_idx=0 row zeroed.
    embedding = jax.random.normal(k_emb, (vocab_size, embedding_dim), jnp.float32)
    embedding = embedding.at[0].set(0.0)

    # nn.Linear: U(-1/sqrt(fan_in), 1/sqrt(fan_in)); weights stored transposed.
    bound1 = 1.0 / jnp.sqrt(embedding_dim)
    w1 = jax.random.uniform(k_w1, (embedding_dim, hidden_dim), jnp.float32,
                            -bound1, bound1)
    b1 = jax.random.uniform(k_b1, (1, hidden_dim), jnp.float32, -bound1, bound1)

    bound2 = 1.0 / jnp.sqrt(hidden_dim)
    w2 = jax.random.uniform(k_w2, (hidden_dim, num_tags), jnp.float32,
                            -bound2, bound2)
    b2 = jax.random.uniform(k_b2, (1, num_tags), jnp.float32, -bound2, bound2)

    return embedding, w1, b1, w2, b2


if __name__ == "__main__":
    # Small, forward-consistent shapes.
    vocab_size, embedding_dim, hidden_dim, num_tags = 64, 32, 32, 8
    batch, seq = 2, 8

    key = jax.random.PRNGKey(0)
    k_tok, k_params = jax.random.split(key)

    embedding, w1, b1, w2, b2 = init_params(
        k_params, vocab_size, embedding_dim, hidden_dim, num_tags)

    # Pad + fuse once, at init time (not per call).
    params = prepare_params(embedding, w1, b1, w2, b2)

    tokens = jax.random.randint(k_tok, (batch, seq), 0, vocab_size, jnp.int32)

    logits = ner_forward(tokens, params)
    jax.block_until_ready(logits)

    assert logits.shape == (batch, seq, num_tags)
    assert logits.dtype == jnp.float32

    # Cross-check against a pure-JAX reference of the same forward pass.
    # (Tolerance slightly loosened vs 1e-5: the offline emb@w1 fusion is exact
    # only up to f32 matmul rounding/reassociation.)
    emb_ref = jnp.take(embedding, tokens, axis=0)
    h_ref = jnp.maximum(emb_ref @ w1 + b1.reshape(-1), 0.0)
    ref = h_ref @ w2 + b2.reshape(-1)
    assert jnp.allclose(logits, ref, atol=1e-4, rtol=1e-4), \
        float(jnp.max(jnp.abs(logits - ref)))

    print("KERNEL_OK")
</pallas_src>

<mosaic_0001>
module attributes {stable_mosaic.version = 11 : i64} {
  func.func @ner_fused_kernel(%arg0: i32, %arg1: memref<8x1xi32, #tpu.memory_space<vmem>>, %arg2: memref<128x128xf32, #tpu.memory_space<vmem>>, %arg3: memref<128x128xf32, #tpu.memory_space<vmem>>, %arg4: memref<1x128xf32, #tpu.memory_space<vmem>>, %arg5: memref<8x128xf32, #tpu.memory_space<vmem>>) attributes {dimension_semantics = [#tpu.dimension_semantics<parallel>], iteration_bounds = array<i64: 2>, scalar_prefetch = 0 : i64, scratch_operands = 0 : i64, tpu.core_type = #tpu.core_type<tc>, window_params = [{transform_indices = @transform_0, window_bounds = array<i64: 8, 1>}, {pipeline_mode = #tpu.pipeline_mode<synchronous>, transform_indices = @transform_1, window_bounds = array<i64: 128, 128>}, {pipeline_mode = #tpu.pipeline_mode<synchronous>, transform_indices = @transform_2, window_bounds = array<i64: 128, 128>}, {pipeline_mode = #tpu.pipeline_mode<synchronous>, transform_indices = @transform_3, window_bounds = array<i64: 1, 128>}, {transform_indices = @transform_4, window_bounds = array<i64: 8, 128>}]} {
    %c0 = arith.constant 0 : index
    %c0_0 = arith.constant 0 : index
    %0 = vector.load %arg1[%c0, %c0_0] : memref<8x1xi32, #tpu.memory_space<vmem>>, vector<8x1xi32>
    %1 = tpu.iota {dimensions = array<i32: 1>} : vector<8x128xi32>
    %2 = vector.broadcast %0 : vector<8x1xi32> to vector<8x128xi32>
    %3 = arith.cmpi eq, %2, %1 : vector<8x128xi32>
    %4 = arith.extui %3 : vector<8x128xi1> to vector<8x128xi32>
    %5 = arith.sitofp %4 : vector<8x128xi32> to vector<8x128xf32>
    %c0_1 = arith.constant 0 : index
    %c0_2 = arith.constant 0 : index
    %6 = vector.load %arg2[%c0_1, %c0_2] : memref<128x128xf32, #tpu.memory_space<vmem>>, vector<128x128xf32>
    %cst = arith.constant dense<0.000000e+00> : vector<8x128xf32>
    %7 = tpu.matmul %5, %6, %cst {dimension_numbers = #tpu.dot_dimension_numbers<[1], [0], [0], [1], [0, 0, 1, 1], [], []>} : vector<8x128xf32>, vector<128x128xf32>, vector<8x128xf32> -> vector<8x128xf32>
    %cst_3 = arith.constant 0.000000e+00 : f32
    %8 = vector.broadcast %cst_3 : f32 to vector<8x128xf32>
    %9 = arith.maximumf %7, %8 : vector<8x128xf32>
    %c0_4 = arith.constant 0 : index
    %c0_5 = arith.constant 0 : index
    %10 = vector.load %arg3[%c0_4, %c0_5] : memref<128x128xf32, #tpu.memory_space<vmem>>, vector<128x128xf32>
    %cst_6 = arith.constant dense<0.000000e+00> : vector<8x128xf32>
    %11 = tpu.matmul %9, %10, %cst_6 {dimension_numbers = #tpu.dot_dimension_numbers<[1], [0], [0], [1], [0, 0, 1, 1], [], []>} : vector<8x128xf32>, vector<128x128xf32>, vector<8x128xf32> -> vector<8x128xf32>
    %c0_7 = arith.constant 0 : index
    %c0_8 = arith.constant 0 : index
    %12 = vector.load %arg4[%c0_7, %c0_8] : memref<1x128xf32, #tpu.memory_space<vmem>>, vector<1x128xf32>
    %13 = vector.broadcast %12 : vector<1x128xf32> to vector<8x128xf32>
    %14 = arith.addf %11, %13 : vector<8x128xf32>
    %c0_9 = arith.constant 0 : index
    %c0_10 = arith.constant 0 : index
    %15 = vector.load %arg5[%c0_9, %c0_10] : memref<8x128xf32, #tpu.memory_space<vmem>>, vector<8x128xf32>
    tpu.vector_store %arg5[%c0_9, %c0_10], %14 {strides = array<i32>} : memref<8x128xf32, #tpu.memory_space<vmem>>, vector<8x128xf32>,
    return
  }
  func.func @transform_0(%arg0: i32) -> (i32, i32) {
    %c0_i32 = arith.constant 0 : i32
    %c0_i32_0 = arith.constant 0 : i32
    return %arg0, %c0_i32 : i32, i32
  }
  func.func @transform_1(%arg0: i32) -> (i32, i32) {
    %c0_i32 = arith.constant 0 : i32
    %c0_i32_0 = arith.constant 0 : i32
    %c0_i32_1 = arith.constant 0 : i32
    return %c0_i32, %c0_i32_0 : i32, i32
  }
  func.func @transform_2(%arg0: i32) -> (i32, i32) {
    %c0_i32 = arith.constant 0 : i32
    %c0_i32_0 = arith.constant 0 : i32
    %c0_i32_1 = arith.constant 0 : i32
    return %c0_i32, %c0_i32_0 : i32, i32
  }
  func.func @transform_3(%arg0: i32) -> (i32, i32) {
    %c0_i32 = arith.constant 0 : i32
    %c0_i32_0 = arith.constant 0 : i32
    %c0_i32_1 = arith.constant 0 : i32
    return %c0_i32, %c0_i32_0 : i32, i32
  }
  func.func @transform_4(%arg0: i32) -> (i32, i32) {
    %c0_i32 = arith.constant 0 : i32
    %c0_i32_0 = arith.constant 0 : i32
    return %arg0, %c0_i32 : i32, i32
  }
}

module attributes {stable_mosaic.version = 11 : i64} {
  func.func @ner_fused_kernel(%arg0: i32, %arg1: memref<8x1xi32, #tpu.memory_space<vmem>>, %arg2: memref<128x128xf32, #tpu.memory_space<vmem>>, %arg3: memref<128x128xf32, #tpu.memory_space<vmem>>, %arg4: memref<1x128xf32, #tpu.memory_space<vmem>>, %arg5: memref<8x128xf32, #tpu.memory_space<vmem>>) attributes {dimension_semantics = [#tpu.dimension_semantics<parallel>], iteration_bounds = array<i64: 2>, scalar_prefetch = 0 : i64, scratch_operands = 0 : i64, tpu.core_type = #tpu.core_type<tc>, window_params = [{transform_indices = @transform_0, window_bounds = array<i64: 8, 1>}, {pipeline_mode = #tpu.pipeline_mode<synchronous>, transform_indices = @transform_1, window_bounds = array<i64: 128, 128>}, {pipeline_mode = #tpu.pipeline_mode<synchronous>, transform_indices = @transform_2, window_bounds = array<i64: 128, 128>}, {pipeline_mode = #tpu.pipeline_mode<synchronous>, transform_indices = @transform_3, window_bounds = array<i64: 1, 128>}, {transform_indices = @transform_4, window_bounds = array<i64: 8, 128>}]} {
    %c0 = arith.constant 0 : index
    %c0_0 = arith.constant 0 : index
    %0 = vector.load %arg1[%c0, %c0_0] : memref<8x1xi32, #tpu.memory_space<vmem>>, vector<8x1xi32>
    %1 = tpu.iota {dimensions = array<i32: 1>} : vector<8x128xi32>
    %2 = vector.broadcast %0 : vector<8x1xi32> to vector<8x128xi32>
    %3 = arith.cmpi eq, %2, %1 : vector<8x128xi32>
    %4 = arith.extui %3 : vector<8x128xi1> to vector<8x128xi32>
    %5 = arith.sitofp %4 : vector<8x128xi32> to vector<8x128xf32>
    %c0_1 = arith.constant 0 : index
    %c0_2 = arith.constant 0 : index
    %6 = vector.load %arg2[%c0_1, %c0_2] : memref<128x128xf32, #tpu.memory_space<vmem>>, vector<128x128xf32>
    %cst = arith.constant dense<0.000000e+00> : vector<8x128xf32>
    %7 = tpu.matmul %5, %6, %cst {dimension_numbers = #tpu.dot_dimension_numbers<[1], [0], [0], [1], [0, 0, 1, 1], [], []>} : vector<8x128xf32>, vector<128x128xf32>, vector<8x128xf32> -> vector<8x128xf32>
    %cst_3 = arith.constant 0.000000e+00 : f32
    %8 = vector.broadcast %cst_3 : f32 to vector<8x128xf32>
    %9 = arith.maximumf %7, %8 : vector<8x128xf32>
    %c0_4 = arith.constant 0 : index
    %c0_5 = arith.constant 0 : index
    %10 = vector.load %arg3[%c0_4, %c0_5] : memref<128x128xf32, #tpu.memory_space<vmem>>, vector<128x128xf32>
    %cst_6 = arith.constant dense<0.000000e+00> : vector<8x128xf32>
    %11 = tpu.matmul %9, %10, %cst_6 {dimension_numbers = #tpu.dot_dimension_numbers<[1], [0], [0], [1], [0, 0, 1, 1], [], []>} : vector<8x128xf32>, vector<128x128xf32>, vector<8x128xf32> -> vector<8x128xf32>
    %c0_7 = arith.constant 0 : index
    %c0_8 = arith.constant 0 : index
    %12 = vector.load %arg4[%c0_7, %c0_8] : memref<1x128xf32, #tpu.memory_space<vmem>>, vector<1x128xf32>
    %13 = vector.broadcast %12 : vector<1x128xf32> to vector<8x128xf32>
    %14 = arith.addf %11, %13 : vector<8x128xf32>
    %c0_9 = arith.constant 0 : index
    %c0_10 = arith.constant 0 : index
    %15 = vector.load %arg5[%c0_9, %c0_10] : memref<8x128xf32, #tpu.memory_space<vmem>>, vector<8x128xf32>
    tpu.vector_store %arg5[%c0_9, %c0_10], %14 {strides = array<i32>} : memref<8x128xf32, #tpu.memory_space<vmem>>, vector<8x128xf32>,
    return
  }
  func.func @transform_0(%arg0: i32) -> (i32, i32) {
    %c0_i32 = arith.constant 0 : i32
    %c0_i32_0 = arith.constant 0 : i32
    return %arg0, %c0_i32 : i32, i32
  }
  func.func @transform_1(%arg0: i32) -> (i32, i32) {
    %c0_i32 = arith.constant 0 : i32
    %c0_i32_0 = arith.constant 0 : i32
    %c0_i32_1 = arith.constant 0 : i32
    return %c0_i32, %c0_i32_0 : i32, i32
  }
  func.func @transform_2(%arg0: i32) -> (i32, i32) {
    %c0_i32 = arith.constant 0 : i32
    %c0_i32_0 = arith.constant 0 : i32
    %c0_i32_1 = arith.constant 0 : i32
    return %c0_i32, %c0_i32_0 : i32, i32
  }
  func.func @transform_3(%arg0: i32) -> (i32, i32) {
    %c0_i32 = arith.constant 0 : i32
    %c0_i32_0 = arith.constant 0 : i32
    %c0_i32_1 = arith.constant 0 : i32
    return %c0_i32, %c0_i32_0 : i32, i32
  }
  func.func @transform_4(%arg0: i32) -> (i32, i32) {
    %c0_i32 = arith.constant 0 : i32
    %c0_i32_0 = arith.constant 0 : i32
    return %arg0, %c0_i32 : i32, i32
  }
}

</mosaic_0001>

<bundles_post_ra>
// kernel: tpu_custom_call.1
= control target key start
LH: loop header
LB: loop body
LE: loop exit
PB: predicated region body
PF: predicated region fallthrough
CT: control target
= control target key end

     0   :  { %9 = vsyncpa [#allocation3], 0  ;;  %s1099_s0 = inlined_call_operand.vmem [shape: s32[16,1], index: 0, kind: input, shape index: {}]   ;;  %s1100_s1 = inlined_call_operand.hbm [shape: f32[128,128], index: 1, kind: input, shape index: {}]   ;;  %s1101_s2 = inlined_call_operand.hbm [shape: f32[128,128], index: 2, kind: input, shape index: {}]   ;;  %s1102_s3 = inlined_call_operand.vmem [shape: f32[1,128], index: 3, kind: input, shape index: {}]   ;;  %s1103_s4 = inlined_call_operand.hbm [shape: f32[16,128], index: 4, kind: output, shape index: {}]  }
   0x1   :  { %10 = vsyncpa [#allocation6], 0 }
   0x2   :  { %11 = vsyncpa [#allocation4], 0 }
   0x3   :  { %13 = vsyncpa [#allocation4 + $0x1], 0  ;;  %s908_s15 = smov 0   ;;  %s910_s16 = smov 0  }
   0x4   :  { %s912_s17 = smov 0   ;;  %s914_s18 = smov 0  }
   0x5 LB: > { %s929_s19 = sadd.s32 4294967295, %s871_s18   ;;  %s508_s20 = sadd.s32 4294967294, %s871_s18   ;;  %s871_s18 = sphi %s914_s18, %s1121_s18   ;;  %s867_s17 = sphi %s912_s17, %s1120_s17   ;;  %s863_s16 = sphi %s910_s16, %s1119_s16   ;;  %s859_s15 = sphi %s908_s15, %s1118_s15  }
   0x6   : > { %s933_s21 = sadd.s32 1, %s871_s18   ;;  %s115_s22 = sadd.s32 1, %s867_s17 }
   0x7   : > { %s112_s23 = ssub.s32 %s871_s18, %s933_s21  ;;  %p125_p0 = scmp.ne.s32.totalorder %s867_s17, %s863_s16 }
   0x8   : > { %p113_p1 = scmp.eq.s32.totalorder %s112_s23, 0  ;;  %p126_p2 = scmp.eq.s32.totalorder %s929_s19, 1 }
   0x9   : > { %p131_p3 = scmp.ne.s32.totalorder %s863_s16, %s859_s15  ;;  %p132_p4 = scmp.eq.s32.totalorder %s508_s20, 1 }
   0xa   : > { %s944_s24 = scalar_select %p113_p1, %s867_s17, %s115_s22  }
   0xb   : > { %p946_p5 = por %p126_p2, %p125_p0  ;;  %p950_p6 = por %p132_p4, %p131_p3 }
   0xc   : > { %p509_p7 = scmp.ge.s32.totalorder %s871_s18, 1  ;;  %p139_p8 = scmp.lt.s32.totalorder %s871_s18, 3 }
   0xd   : > { %s1107_s25 = scalar_select %p946_p5, 1, 0 }
   0xe   : > { %s1108_s26 = scalar_select %p950_p6, 1, 0 }
   0xf   : > { %p1104_p9 = scmp.eq.s32.totalorder %s929_s19, 0  ;;  %p957_p10 = pnand %p509_p7, %p139_p8 }
  0x10   : > { %s873_s28 = smov [#allocation2]   ;;  %s874_s5 = smov [#allocation5]  }
  0x11   : > { %s1109_s27 = scalar_select %p957_p10, 1, 0 }
  0x12   : > { %s151_s29 = sshll.u32 %s873_s28, 4  ;;  %p687_p11 = pneg %p957_p10  ;;  %s152_s29 = int_to_ptr.vmem [resolvable:$true] %s151_s29 }
  0x13   : > { %s164_s6 = sshll.u32 %s874_s5, 4  ;;  %s745_s9 = scalar_lea.hbm %s1100_s1, 2048  ;;  %s969_s6 = int_to_ptr.vmem [resolvable:$true] %s164_s6 }
  0x14   : > { %p965_p12 = pnand %p1104_p9, %p687_p11  ;;  %p746_p13 = scmp.ne.s32.totalorder %s1100_s1, %s745_s9 }
  0x15   : > { %p752_p3 = scmp.lt.u32.totalorder %s745_s9, %s1100_s1 }
  0x16   : > { %p747_p0 = pneg %p965_p12 }
  0x18   : > { %p748_p1 = pnand %p747_p0, %p746_p13 }
  0x1a   : > { %p749_p2 = pneg %p748_p1 }
  0x1c   : > { %p754_p4 = pnand %p752_p3, %p749_p2 }
  0x1e   : > { %757 = shalt.err (!%p754_p4)
}
  0x1f   : > { %s758_s14 = scalar_lea.vmem %s152_s29, 2048  ;;  %p766_p9 = scmp.lt.s32.totalorder %s152_s29, %s152_s29 }
  0x20   : > { %p759_p7 = scmp.ne.s32.totalorder %s152_s29, %s758_s14  ;;  %p767_p6 = scmp.lt.s32.totalorder %s758_s14, %s758_s14 }
  0x22   : > { %p761_p8 = pnand %p759_p7, %p747_p0  ;;  %p768_p5 = por %p767_p6, %p766_p9 }
  0x24   : > { %p762_p11 = pneg %p761_p8 }
  0x26   : > { %p769_p10 = pnand %p768_p5, %p762_p11 }
  0x28   : > { %772 = shalt.err (!%p769_p10)
}
  0x29   : > { %s875_s20 = smov 128   ;;  %s876_s22 = smov 8  }
  0x2a   : > { %690 = dma.hbm_to_vmem [thread:$0]  (!%p965_p12), %s1100_s1, 2048, %s152_s29, [#allocation3], %s875_s20, %s875_s20, %s876_s22  }
  0x2b   : > { %s773_s8 = scalar_lea.hbm %s1101_s2, 2048 }
  0x2c   : > { %p774_p13 = scmp.ne.s32.totalorder %s1101_s2, %s773_s8  ;;  %p780_p9 = scmp.lt.u32.totalorder %s773_s8, %s1101_s2 }
  0x2e   : > { %p776_p5 = pnand %p774_p13, %p747_p0 }
  0x30   : > { %p777_p6 = pneg %p776_p5 }
  0x32   : > { %p782_p10 = pnand %p780_p9, %p777_p6 }
  0x34   : > { %785 = shalt.err (!%p782_p10)
}
  0x35   : > { %s786_s29 = scalar_lea.vmem %s969_s6, 2048  ;;  %p794_p4 = scmp.lt.s32.totalorder %s969_s6, %s969_s6 }
  0x36   : > { %p787_p1 = scmp.ne.s32.totalorder %s969_s6, %s786_s29  ;;  %p795_p7 = scmp.lt.s32.totalorder %s786_s29, %s786_s29 }
  0x38   : > { %p789_p2 = pnand %p787_p1, %p747_p0  ;;  %p796_p8 = por %p795_p7, %p794_p4 }
  0x3a   : > { %p790_p3 = pneg %p789_p2 }
  0x3c   : > { %p797_p11 = pnand %p796_p8, %p790_p3 }
  0x3e   : > { %800 = shalt.err (!%p797_p11)
}
  0x3f   : > { %693 = dma.hbm_to_vmem [thread:$0]  (!%p965_p12), %s1101_s2, 2048, %s969_s6, [#allocation6], %s875_s20, %s875_s20, %s876_s22  }
  0x40   : > { %p1111_p13 = scmp.ne.s32.totalorder %s1109_s27, 0 }
  0x41   : > { %p1112_p5 = scmp.eq.s32.totalorder (!%p1111_p13), %s929_s19, 0 }
  0x42   : > { %190 = sbr.rel (%p1111_p13) target bundleno = 656 (0x290), region = 36 }
  0x49   : > { %846 = dma.done.wait (%p1112_p5), [#allocation3], 2048   ;;  %p1113_p0 = pmov %p1112_p5 }
  0x4b   : > { %848 = vsyncadd (%p1113_p0), [#allocation3], 4294965248  ;;  %p1114_p6 = pmov %p1113_p0 }
  0x4c   : > { %p1115_p9 = pmov %p1113_p0 }
  0x4d   : > { %850 = dma.done.wait (%p1114_p6), [#allocation6], 2048  }
  0x4e   : > { %852 = vsyncadd (%p1115_p9), [#allocation6], 4294965248  ;;  %p219_p10 = scmp.lt.s32.totalorder %s929_s19, 1  ;;  %v877_v0 = vmov 0   ;;  %v878_v1 = vmov 0.0|0.0   ;;  %v232_v3 = vld [vmem:[#allocation2] sm:$0xff]  ;;  %v224_v49 = vlaneseq }
  0x4f   : > { %744 = vset.pattern.permute.xlu0 %v877_v0  ;;  %629 = vmatprep.subr.bf16.mxu0 %v878_v1  ;;  %v233_v4 = vld [vmem:[#allocation2 + $0x8] sm:$0xff]  ;;  %v234_v6 = vld [vmem:[#allocation2 + $0x10] sm:$0xff]  ;;  %v235_v7 = vld [vmem:[#allocation2 + $0x18] sm:$0xff]  ;;  %vm879_vm0 = vmmov 0   ;;  %v880_v8 = vmov 0.0   ;;  %v881_v52 = vmov 1.0  }
  0x50   : > { %s220_s27 = scalar_select %p219_p10, %s929_s19, 1  ;;  %653 = vmatprep.subr.bf16.mxu1 %v878_v1  ;;  %v630_v5 = vpack.c.bf16 %v233_v4, %v232_v3  ;;  %591 = vmatprep.mubr.msk.f32.mxu0 %vm879_vm0, %v880_v8  ;;  %v633_v9 = vpack.c.bf16 %v235_v7, %v234_v6  ;;  %v236_v10 = vld [vmem:[#allocation2 + $0x20] sm:$0xff]  ;;  %v237_v11 = vld [vmem:[#allocation2 + $0x28] sm:$0xff]  ;;  %v321_v14 = vld [vmem:[#allocation5 + $0x10] sm:$0xff]  ;;  %v225_v50 = vand.u32 127, %v224_v49 }
  0x51   : > { %626 = vmatprep.mubr.msk.f32.mxu1 %vm879_vm0, %v880_v8  ;;  %v319_v12 = vld [vmem:[#allocation5] sm:$0xff]  ;;  %v320_v13 = vld [vmem:[#allocation5 + $0x8] sm:$0xff]  ;;  %v322_v15 = vld [vmem:[#allocation5 + $0x18] sm:$0xff]  ;;  %v636_v16 = vpack.c.bf16 %v237_v11, %v236_v10  ;;  %s216_s23 = sand.u32 1, %s863_s16   ;;  %s522_s8 = sshll.u32 %s929_s19, 7 }
  0x52   : > { %s517_s30 = sshll.u32 %s220_s27, 3  ;;  %631 = vmatpush3.bf16.msra.mxu0 %v630_v5  ;;  %v654_v17 = vpack.c.bf16 %v320_v13, %v319_v12  ;;  %v238_v18 = vld [vmem:[#allocation2 + $0x30] sm:$0xff]  ;;  %v239_v19 = vld [vmem:[#allocation2 + $0x38] sm:$0xff]  ;;  %v657_v20 = vpack.c.bf16 %v322_v15, %v321_v14  ;;  %v323_v21 = vld [vmem:[#allocation5 + $0x20] sm:$0xff]  ;;  %s516_s28 = sshll.u32 %s216_s23, 3 }
  0x53   : > { %s222_s22 = scalar_lea.vmem %s1099_s0, %s517_s30  ;;  %632 = vmatprep.subr.bf16.mxu0 %v878_v1  ;;  %v324_v22 = vld [vmem:[#allocation5 + $0x28] sm:$0xff]  ;;  %v639_v23 = vpack.c.bf16 %v239_v19, %v238_v18  ;;  %v240_v24 = vld [vmem:[#allocation2 + $0x40] sm:$0xff]  ;;  %v325_v27 = vld [vmem:[#allocation5 + $0x30] sm:$0xff]  ;;  %s218_s9 = scalar_lea.vmem [#allocation7], %s516_s28 }
  0x54   : > { %v223_v2 = vld [vmem:[%s222_s22] sm:$0xff]  ;;  %655 = vmatpush3.bf16.msra.mxu1 %v654_v17  ;;  %v660_v26 = vpack.c.bf16 %v324_v22, %v323_v21  ;;  %v326_v28 = vld [vmem:[#allocation5 + $0x38] sm:$0xff]  ;;  %v242_v30 = vld [vmem:[#allocation2 + $0x50] sm:$0xff]  ;;  %s427_s10 = sshll.u32 %s218_s9, 4  ;;  %s1057_s29 = scalar_lea.hbm %s1103_s4, %s522_s8  ;;  %s1059_s10 = int_to_ptr.vmem [resolvable:$true] %s427_s10 }
  0x55   : > { %227 = vperm.xlu0 %744, %v223_v2   ;;  %656 = vmatprep.subr.bf16.mxu1 %v878_v1  ;;  %v241_v25 = vld [vmem:[#allocation2 + $0x48] sm:$0xff]  ;;  %v243_v31 = vld [vmem:[#allocation2 + $0x58] sm:$0xff]  ;;  %v663_v32 = vpack.c.bf16 %v326_v28, %v325_v27  ;;  %v327_v33 = vld [vmem:[#allocation5 + $0x40] sm:$0xff]  ;;  %s414_s13 = scalar_lea.sflag [#allocation4], %s216_s23  ;;  %s801_s14 = scalar_lea.vmem %s1059_s10, 128 }
  0x56   : > { %634 = vmatpush3.bf16.msra.mxu0 %v633_v9  ;;  %v642_v29 = vpack.c.bf16 %v241_v25, %v240_v24  ;;  %v328_v34 = vld [vmem:[#allocation5 + $0x48] sm:$0xff]  ;;  %v645_v35 = vpack.c.bf16 %v243_v31, %v242_v30  ;;  %v244_v36 = vld [vmem:[#allocation2 + $0x60] sm:$0xff]  ;;  %v329_v39 = vld [vmem:[#allocation5 + $0x50] sm:$0xff]  ;;  %p802_p12 = scmp.ne.s32.totalorder %s1059_s10, %s801_s14  ;;  %p1116_p1 = scmp.ne.s32.totalorder %s1107_s25, 0 }
  0x57   : > { %635 = vmatprep.subr.bf16.mxu0 %v878_v1  ;;  %v245_v37 = vld [vmem:[#allocation2 + $0x68] sm:$0xff]  ;;  %v666_v38 = vpack.c.bf16 %v328_v34, %v327_v33  ;;  %v330_v40 = vld [vmem:[#allocation5 + $0x58] sm:$0xff]  ;;  %v246_v42 = vld [vmem:[#allocation2 + $0x70] sm:$0xff]  ;;  %s882_s19 = smov [#allocation7]  }
  0x58   : > { %658 = vmatpush3.bf16.msra.mxu1 %v657_v20  ;;  %v648_v41 = vpack.c.bf16 %v245_v37, %v244_v36  ;;  %v247_v43 = vld [vmem:[#allocation2 + $0x78] sm:$0xff]  ;;  %v669_v44 = vpack.c.bf16 %v330_v40, %v329_v39  ;;  %v331_v45 = vld [vmem:[#allocation5 + $0x60] sm:$0xff]  ;;  %v332_v46 = vld [vmem:[#allocation5 + $0x68] sm:$0xff]  ;;  %p803_p2 = pnand %p802_p12, %p1116_p1  ;;  %s805_s27 = sshll.u32 %s882_s19, 4  ;;  %s806_s27 = int_to_ptr.vmem [resolvable:$false] %s805_s27 }
  0x59   : > { %659 = vmatprep.subr.bf16.mxu1 %v878_v1  ;;  %v651_v47 = vpack.c.bf16 %v247_v43, %v246_v42  ;;  %v672_v48 = vpack.c.bf16 %v332_v46, %v331_v45  ;;  %v333_v53 = vld [vmem:[#allocation5 + $0x70] sm:$0xff]  ;;  %v334_v54 = vld [vmem:[#allocation5 + $0x78] sm:$0xff]  ;;  %v520_v59 = vld [vmem:[%s1102_s3] ss:$0 sm:$0xff]  ;;  %s807_s30 = scalar_lea.vmem %s806_s27, 256  ;;  %p808_p4 = scmp.lt.s32.totalorder %s1059_s10, %s806_s27 }
  0x5a   : > { %637 = vmatpush3.bf16.msra.mxu0 %v636_v16  ;;  %v675_v55 = vpack.c.bf16 %v334_v54, %v333_v53  ;;  %p804_p3 = pneg %p803_p2  ;;  %p809_p7 = scmp.lt.s32.totalorder %s807_s30, %s801_s14 }
  0x5b   : > { %638 = vmatprep.subr.bf16.mxu0 %v878_v1 }
  0x5c   : > { %661 = vmatpush3.bf16.msra.mxu1 %v660_v26  ;;  %p810_p8 = por %p809_p7, %p808_p4 }
  0x5d   : > { %662 = vmatprep.subr.bf16.mxu1 %v878_v1 }
  0x5e   : > { %640 = vmatpush3.bf16.msra.mxu0 %v639_v23  ;;  %p811_p11 = pnand %p810_p8, %p804_p3 }
  0x5f   : > { %641 = vmatprep.subr.bf16.mxu0 %v878_v1 }
  0x60   : > { %664 = vmatpush3.bf16.msra.mxu1 %v663_v32 }
  0x61   : > { %665 = vmatprep.subr.bf16.mxu1 %v878_v1 }
  0x62   : > { %643 = vmatpush3.bf16.msra.mxu0 %v642_v29 }
  0x63   : > { %644 = vmatprep.subr.bf16.mxu0 %v878_v1 }
  0x64   : > { %667 = vmatpush3.bf16.msra.mxu1 %v666_v38 }
  0x65   : > { %668 = vmatprep.subr.bf16.mxu1 %v878_v1 }
  0x66   : > { %646 = vmatpush3.bf16.msra.mxu0 %v645_v35 }
  0x67   : > { %647 = vmatprep.subr.bf16.mxu0 %v878_v1 }
  0x68   : > { %670 = vmatpush3.bf16.msra.mxu1 %v669_v44 }
  0x69   : > { %671 = vmatprep.subr.bf16.mxu1 %v878_v1 }
  0x6a   : > { %649 = vmatpush3.bf16.msra.mxu0 %v648_v41 }
  0x6b   : > { %650 = vmatprep.subr.bf16.mxu0 %v878_v1 }
  0x6c   : > { %673 = vmatpush3.bf16.msra.mxu1 %v672_v48 }
  0x6d   : > { %674 = vmatprep.subr.bf16.mxu1 %v878_v1 }
  0x6e   : > { %652 = vmatpush3.bf16.msra.mxu0 %v651_v47 }
  0x70   : > { %676 = vmatpush3.bf16.msra.mxu1 %v675_v55 }
  0xd4   : > { %v228_v51 = vpop.permute.xlu0 %227 }
  0xd5   : > { %vm229_vm1 = vcmp.eq.s32.totalorder %v228_v51, %v225_v50 }
  0xd6   : > { %592 = vmatmul.mubr.msk.f32.vlgmr.msra.gmra.mrb[0].mxu0 %vm229_vm1, %v881_v52 }
 0x1a9   : > { %v314_v56 = vpop.f32.mrb[0].mxu0 }
 0x1aa   : > { %v318_v57 = vmax.f32 %v314_v56, 0.0  ;;  %v593_v58 = vpop.f32.mrb[1].mxu0 }
 0x1ac   : > { %627 = vmatmul.mubr.f32.vlgmr.msra.gmra.mrb[0].mxu1 %v318_v57 }
 0x27f   : > { %v408_v60 = vpop.f32.mrb[0].mxu1 }
 0x280   : > { %v409_v61 = vadd.f32 %v520_v59, %v408_v60  ;;  %v628_v62 = vpop.f32.mrb[1].mxu1 }
 0x282   : > { %412 = vst [vmem:[%s218_s9] sm:$0xff] %v409_v61 }
 0x283   : > { %814 = shalt.err (!%p811_p11)
}
 0x284   : > { %s815_s6 = scalar_lea.hbm %s1057_s29, 128  ;;  %s819_s23 = scalar_lea.hbm %s1103_s4, 256 }
 0x285   : > { %p816_p13 = scmp.ne.s32.totalorder %s1057_s29, %s815_s6  ;;  %p820_p6 = scmp.lt.u32.totalorder %s1057_s29, %s1103_s4 }
 0x286   : > { %p821_p9 = scmp.lt.u32.totalorder %s819_s23, %s815_s6  ;;  %p823_p12 = scmp.lt.u32.totalorder %s815_s6, %s1057_s29 }
 0x287   : > { %p817_p5 = pnand %p816_p13, %p1116_p1 }
 0x288   : > { %p822_p10 = por %p821_p9, %p820_p6 }
 0x289   : > { %p818_p0 = pneg %p817_p5 }
 0x28a   : > { %p824_p2 = por %p823_p12, %p822_p10 }
 0x28c   : > { %p825_p3 = pnand %p824_p2, %p818_p0 }
 0x28e   : > { %828 = shalt.err (!%p825_p3)
}
 0x28f   : > { %685 = dma.vmem_to_hbm [thread:$0]  (%p1116_p1), %s1059_s10, 128, %s1057_s29, %s414_s13  }
 0x290 PF: > { %p702_p4 = scmp.ge.s32.totalorder %s871_s18, 2  ;;  %s439_s7 = sand.u32 1, %s859_s15  }
 0x291   : > { %p1117_p7 = scmp.ne.s32.totalorder %s1108_s26, 0  ;;  %s440_s8 = scalar_lea.sflag [#allocation4], %s439_s7 }
 0x293   : > { %p695_p8 = pnand %p702_p4, %p1117_p7 }
 0x295   : > { %854 = dma.done.wait (!%p695_p8), %s440_s8, 128  }
 0x296   : > { %856 = vsyncadd (!%p695_p8), %s440_s8, 4294967168  ;;  %p16_p11 = scmp.ge.s32.totalorder %s933_s21, 4   ;;  %s1118_s15 = smov %s863_s16 }
 0x297   : > { %s1119_s16 = smov %s867_s17  ;;  %s1120_s17 = smov %s944_s24 }
 0x298   : > { %s1121_s18 = smov %s933_s21  ;;  %18 = sbr.rel (!%p16_p11) target bundleno = 5 (0x5), region = 80 }
 0x29f   :  { %445 = vsyncpa [#allocation3], 1 }
 0x2a0   :  { %447 = vsyncpa [#allocation3 + $0x1], 1 }
 0x2a1   :  { %448 = vsyncpa [#allocation6], 1 }
 0x2a2   :  { %449 = vsyncpa [#allocation4], 1 }
 0x2a3   :  { %451 = vsyncpa [#allocation4 + $0x1], 1 }

// kernel: tpu_custom_call.1
= control target key start
LH: loop header
LB: loop body
LE: loop exit
PB: predicated region body
PF: predicated region fallthrough
CT: control target
= control target key end

     0   :  { %9 = vsyncpa [#allocation3], 0  ;;  %s1099_s0 = inlined_call_operand.vmem [shape: s32[16,1], index: 0, kind: input, shape index: {}]   ;;  %s1100_s1 = inlined_call_operand.hbm [shape: f32[128,128], index: 1, kind: input, shape index: {}]   ;;  %s1101_s2 = inlined_call_operand.hbm [shape: f32[128,128], index: 2, kind: input, shape index: {}]   ;;  %s1102_s3 = inlined_call_operand.vmem [shape: f32[1,128], index: 3, kind: input, shape index: {}]   ;;  %s1103_s4 = inlined_call_operand.hbm [shape: f32[16,128], index: 4, kind: output, shape index: {}]  }
   0x1   :  { %10 = vsyncpa [#allocation6], 0 }
   0x2   :  { %11 = vsyncpa [#allocation4], 0 }
   0x3   :  { %13 = vsyncpa [#allocation4 + $0x1], 0  ;;  %s908_s15 = smov 0   ;;  %s910_s16 = smov 0  }
   0x4   :  { %s912_s17 = smov 0   ;;  %s914_s18 = smov 0  }
   0x5 LB: > { %s929_s19 = sadd.s32 4294967295, %s871_s18   ;;  %s508_s20 = sadd.s32 4294967294, %s871_s18   ;;  %s871_s18 = sphi %s914_s18, %s1121_s18   ;;  %s867_s17 = sphi %s912_s17, %s1120_s17   ;;  %s863_s16 = sphi %s910_s16, %s1119_s16   ;;  %s859_s15 = sphi %s908_s15, %s1118_s15  }
   0x6   : > { %s933_s21 = sadd.s32 1, %s871_s18   ;;  %s115_s22 = sadd.s32 1, %s867_s17 }
   0x7   : > { %s112_s23 = ssub.s32 %s871_s18, %s933_s21  ;;  %p125_p0 = scmp.ne.s32.totalorder %s867_s17, %s863_s16 }
   0x8   : > { %p113_p1 = scmp.eq.s32.totalorder %s112_s23, 0  ;;  %p126_p2 = scmp.eq.s32.totalorder %s929_s19, 1 }
   0x9   : > { %p131_p3 = scmp.ne.s32.totalorder %s863_s16, %s859_s15  ;;  %p132_p4 = scmp.eq.s32.totalorder %s508_s20, 1 }
   0xa   : > { %s944_s24 = scalar_select %p113_p1, %s867_s17, %s115_s22  }
   0xb   : > { %p946_p5 = por %p126_p2, %p125_p0  ;;  %p950_p6 = por %p132_p4, %p131_p3 }
   0xc   : > { %p509_p7 = scmp.ge.s32.totalorder %s871_s18, 1  ;;  %p139_p8 = scmp.lt.s32.totalorder %s871_s18, 3 }
   0xd   : > { %s1107_s25 = scalar_select %p946_p5, 1, 0 }
   0xe   : > { %s1108_s26 = scalar_select %p950_p6, 1, 0 }
   0xf   : > { %p1104_p9 = scmp.eq.s32.totalorder %s929_s19, 0  ;;  %p957_p10 = pnand %p509_p7, %p139_p8 }
  0x10   : > { %s873_s28 = smov [#allocation2]   ;;  %s874_s5 = smov [#allocation5]  }
  0x11   : > { %s1109_s27 = scalar_select %p957_p10, 1, 0 }
  0x12   : > { %s151_s29 = sshll.u32 %s873_s28, 4  ;;  %p687_p11 = pneg %p957_p10  ;;  %s152_s29 = int_to_ptr.vmem [resolvable:$true] %s151_s29 }
  0x13   : > { %s164_s6 = sshll.u32 %s874_s5, 4  ;;  %s745_s9 = scalar_lea.hbm %s1100_s1, 2048  ;;  %s969_s6 = int_to_ptr.vmem [resolvable:$true] %s164_s6 }
  0x14   : > { %p965_p12 = pnand %p1104_p9, %p687_p11  ;;  %p746_p13 = scmp.ne.s32.totalorder %s1100_s1, %s745_s9 }
  0x15   : > { %p752_p3 = scmp.lt.u32.totalorder %s745_s9, %s1100_s1 }
  0x16   : > { %p747_p0 = pneg %p965_p12 }
  0x18   : > { %p748_p1 = pnand %p747_p0, %p746_p13 }
  0x1a   : > { %p749_p2 = pneg %p748_p1 }
  0x1c   : > { %p754_p4 = pnand %p752_p3, %p749_p2 }
  0x1e   : > { %757 = shalt.err (!%p754_p4)
}
  0x1f   : > { %s758_s14 = scalar_lea.vmem %s152_s29, 2048  ;;  %p766_p9 = scmp.lt.s32.totalorder %s152_s29, %s152_s29 }
  0x20   : > { %p759_p7 = scmp.ne.s32.totalorder %s152_s29, %s758_s14  ;;  %p767_p6 = scmp.lt.s32.totalorder %s758_s14, %s758_s14 }
  0x22   : > { %p761_p8 = pnand %p759_p7, %p747_p0  ;;  %p768_p5 = por %p767_p6, %p766_p9 }
  0x24   : > { %p762_p11 = pneg %p761_p8 }
  0x26   : > { %p769_p10 = pnand %p768_p5, %p762_p11 }
  0x28   : > { %772 = shalt.err (!%p769_p10)
}
  0x29   : > { %s875_s20 = smov 128   ;;  %s876_s22 = smov 8  }
  0x2a   : > { %690 = dma.hbm_to_vmem [thread:$0]  (!%p965_p12), %s1100_s1, 2048, %s152_s29, [#allocation3], %s875_s20, %s875_s20, %s876_s22  }
  0x2b   : > { %s773_s8 = scalar_lea.hbm %s1101_s2, 2048 }
  0x2c   : > { %p774_p13 = scmp.ne.s32.totalorder %s1101_s2, %s773_s8  ;;  %p780_p9 = scmp.lt.u32.totalorder %s773_s8, %s1101_s2 }
  0x2e   : > { %p776_p5 = pnand %p774_p13, %p747_p0 }
  0x30   : > { %p777_p6 = pneg %p776_p5 }
  0x32   : > { %p782_p10 = pnand %p780_p9, %p777_p6 }
  0x34   : > { %785 = shalt.err (!%p782_p10)
}
  0x35   : > { %s786_s29 = scalar_lea.vmem %s969_s6, 2048  ;;  %p794_p4 = scmp.lt.s32.totalorder %s969_s6, %s969_s6 }
  0x36   : > { %p787_p1 = scmp.ne.s32.totalorder %s969_s6, %s786_s29  ;;  %p795_p7 = scmp.lt.s32.totalorder %s786_s29, %s786_s29 }
  0x38   : > { %p789_p2 = pnand %p787_p1, %p747_p0  ;;  %p796_p8 = por %p795_p7, %p794_p4 }
  0x3a   : > { %p790_p3 = pneg %p789_p2 }
  0x3c   : > { %p797_p11 = pnand %p796_p8, %p790_p3 }
  0x3e   : > { %800 = shalt.err (!%p797_p11)
}
  0x3f   : > { %693 = dma.hbm_to_vmem [thread:$0]  (!%p965_p12), %s1101_s2, 2048, %s969_s6, [#allocation6], %s875_s20, %s875_s20, %s876_s22  }
  0x40   : > { %p1111_p13 = scmp.ne.s32.totalorder %s1109_s27, 0 }
  0x41   : > { %p1112_p5 = scmp.eq.s32.totalorder (!%p1111_p13), %s929_s19, 0 }
  0x42   : > { %190 = sbr.rel (%p1111_p13) target bundleno = 656 (0x290), region = 36 }
  0x49   : > { %846 = dma.done.wait (%p1112_p5), [#allocation3], 2048   ;;  %p1113_p0 = pmov %p1112_p5 }
  0x4b   : > { %848 = vsyncadd (%p1113_p0), [#allocation3], 4294965248  ;;  %p1114_p6 = pmov %p1113_p0 }
  0x4c   : > { %p1115_p9 = pmov %p1113_p0 }
  0x4d   : > { %850 = dma.done.wait (%p1114_p6), [#allocation6], 2048  }
  0x4e   : > { %852 = vsyncadd (%p1115_p9), [#allocation6], 4294965248  ;;  %p219_p10 = scmp.lt.s32.totalorder %s929_s19, 1  ;;  %v877_v0 = vmov 0   ;;  %v878_v1 = vmov 0.0|0.0   ;;  %v232_v3 = vld [vmem:[#allocation2] sm:$0xff]  ;;  %v224_v49 = vlaneseq }
  0x4f   : > { %744 = vset.pattern.permute.xlu0 %v877_v0  ;;  %629 = vmatprep.subr.bf16.mxu0 %v878_v1  ;;  %v233_v4 = vld [vmem:[#allocation2 + $0x8] sm:$0xff]  ;;  %v234_v6 = vld [vmem:[#allocation2 + $0x10] sm:$0xff]  ;;  %v235_v7 = vld [vmem:[#allocation2 + $0x18] sm:$0xff]  ;;  %vm879_vm0 = vmmov 0   ;;  %v880_v8 = vmov 0.0   ;;  %v881_v52 = vmov 1.0  }
  0x50   : > { %s220_s27 = scalar_select %p219_p10, %s929_s19, 1  ;;  %653 = vmatprep.subr.bf16.mxu1 %v878_v1  ;;  %v630_v5 = vpack.c.bf16 %v233_v4, %v232_v3  ;;  %591 = vmatprep.mubr.msk.f32.mxu0 %vm879_vm0, %v880_v8  ;;  %v633_v9 = vpack.c.bf16 %v235_v7, %v234_v6  ;;  %v236_v10 = vld [vmem:[#allocation2 + $0x20] sm:$0xff]  ;;  %v237_v11 = vld [vmem:[#allocation2 + $0x28] sm:$0xff]  ;;  %v321_v14 = vld [vmem:[#allocation5 + $0x10] sm:$0xff]  ;;  %v225_v50 = vand.u32 127, %v224_v49 }
  0x51   : > { %626 = vmatprep.mubr.msk.f32.mxu1 %vm879_vm0, %v880_v8  ;;  %v319_v12 = vld [vmem:[#allocation5] sm:$0xff]  ;;  %v320_v13 = vld [vmem:[#allocation5 + $0x8] sm:$0xff]  ;;  %v322_v15 = vld [vmem:[#allocation5 + $0x18] sm:$0xff]  ;;  %v636_v16 = vpack.c.bf16 %v237_v11, %v236_v10  ;;  %s216_s23 = sand.u32 1, %s863_s16   ;;  %s522_s8 = sshll.u32 %s929_s19, 7 }
  0x52   : > { %s517_s30 = sshll.u32 %s220_s27, 3  ;;  %631 = vmatpush3.bf16.msra.mxu0 %v630_v5  ;;  %v654_v17 = vpack.c.bf16 %v320_v13, %v319_v12  ;;  %v238_v18 = vld [vmem:[#allocation2 + $0x30] sm:$0xff]  ;;  %v239_v19 = vld [vmem:[#allocation2 + $0x38] sm:$0xff]  ;;  %v657_v20 = vpack.c.bf16 %v322_v15, %v321_v14  ;;  %v323_v21 = vld [vmem:[#allocation5 + $0x20] sm:$0xff]  ;;  %s516_s28 = sshll.u32 %s216_s23, 3 }
  0x53   : > { %s222_s22 = scalar_lea.vmem %s1099_s0, %s517_s30  ;;  %632 = vmatprep.subr.bf16.mxu0 %v878_v1  ;;  %v324_v22 = vld [vmem:[#allocation5 + $0x28] sm:$0xff]  ;;  %v639_v23 = vpack.c.bf16 %v239_v19, %v238_v18  ;;  %v240_v24 = vld [vmem:[#allocation2 + $0x40] sm:$0xff]  ;;  %v325_v27 = vld [vmem:[#allocation5 + $0x30] sm:$0xff]  ;;  %s218_s9 = scalar_lea.vmem [#allocation7], %s516_s28 }
  0x54   : > { %v223_v2 = vld [vmem:[%s222_s22] sm:$0xff]  ;;  %655 = vmatpush3.bf16.msra.mxu1 %v654_v17  ;;  %v660_v26 = vpack.c.bf16 %v324_v22, %v323_v21  ;;  %v326_v28 = vld [vmem:[#allocation5 + $0x38] sm:$0xff]  ;;  %v242_v30 = vld [vmem:[#allocation2 + $0x50] sm:$0xff]  ;;  %s427_s10 = sshll.u32 %s218_s9, 4  ;;  %s1057_s29 = scalar_lea.hbm %s1103_s4, %s522_s8  ;;  %s1059_s10 = int_to_ptr.vmem [resolvable:$true] %s427_s10 }
  0x55   : > { %227 = vperm.xlu0 %744, %v223_v2   ;;  %656 = vmatprep.subr.bf16.mxu1 %v878_v1  ;;  %v241_v25 = vld [vmem:[#allocation2 + $0x48] sm:$0xff]  ;;  %v243_v31 = vld [vmem:[#allocation2 + $0x58] sm:$0xff]  ;;  %v663_v32 = vpack.c.bf16 %v326_v28, %v325_v27  ;;  %v327_v33 = vld [vmem:[#allocation5 + $0x40] sm:$0xff]  ;;  %s414_s13 = scalar_lea.sflag [#allocation4], %s216_s23  ;;  %s801_s14 = scalar_lea.vmem %s1059_s10, 128 }
  0x56   : > { %634 = vmatpush3.bf16.msra.mxu0 %v633_v9  ;;  %v642_v29 = vpack.c.bf16 %v241_v25, %v240_v24  ;;  %v328_v34 = vld [vmem:[#allocation5 + $0x48] sm:$0xff]  ;;  %v645_v35 = vpack.c.bf16 %v243_v31, %v242_v30  ;;  %v244_v36 = vld [vmem:[#allocation2 + $0x60] sm:$0xff]  ;;  %v329_v39 = vld [vmem:[#allocation5 + $0x50] sm:$0xff]  ;;  %p802_p12 = scmp.ne.s32.totalorder %s1059_s10, %s801_s14  ;;  %p1116_p1 = scmp.ne.s32.totalorder %s1107_s25, 0 }
  0x57   : > { %635 = vmatprep.subr.bf16.mxu0 %v878_v1  ;;  %v245_v37 = vld [vmem:[#allocation2 + $0x68] sm:$0xff]  ;;  %v666_v38 = vpack.c.bf16 %v328_v34, %v327_v33  ;;  %v330_v40 = vld [vmem:[#allocation5 + $0x58] sm:$0xff]  ;;  %v246_v42 = vld [vmem:[#allocation2 + $0x70] sm:$0xff]  ;;  %s882_s19 = smov [#allocation7]  }
  0x58   : > { %658 = vmatpush3.bf16.msra.mxu1 %v657_v20  ;;  %v648_v41 = vpack.c.bf16 %v245_v37, %v244_v36  ;;  %v247_v43 = vld [vmem:[#allocation2 + $0x78] sm:$0xff]  ;;  %v669_v44 = vpack.c.bf16 %v330_v40, %v329_v39  ;;  %v331_v45 = vld [vmem:[#allocation5 + $0x60] sm:$0xff]  ;;  %v332_v46 = vld [vmem:[#allocation5 + $0x68] sm:$0xff]  ;;  %p803_p2 = pnand %p802_p12, %p1116_p1  ;;  %s805_s27 = sshll.u32 %s882_s19, 4  ;;  %s806_s27 = int_to_ptr.vmem [resolvable:$false] %s805_s27 }
  0x59   : > { %659 = vmatprep.subr.bf16.mxu1 %v878_v1  ;;  %v651_v47 = vpack.c.bf16 %v247_v43, %v246_v42  ;;  %v672_v48 = vpack.c.bf16 %v332_v46, %v331_v45  ;;  %v333_v53 = vld [vmem:[#allocation5 + $0x70] sm:$0xff]  ;;  %v334_v54 = vld [vmem:[#allocation5 + $0x78] sm:$0xff]  ;;  %v520_v59 = vld [vmem:[%s1102_s3] ss:$0 sm:$0xff]  ;;  %s807_s30 = scalar_lea.vmem %s806_s27, 256  ;;  %p808_p4 = scmp.lt.s32.totalorder %s1059_s10, %s806_s27 }
  0x5a   : > { %637 = vmatpush3.bf16.msra.mxu0 %v636_v16  ;;  %v675_v55 = vpack.c.bf16 %v334_v54, %v333_v53  ;;  %p804_p3 = pneg %p803_p2  ;;  %p809_p7 = scmp.lt.s32.totalorder %s807_s30, %s801_s14 }
  0x5b   : > { %638 = vmatprep.subr.bf16.mxu0 %v878_v1 }
  0x5c   : > { %661 = vmatpush3.bf16.msra.mxu1 %v660_v26  ;;  %p810_p8 = por %p809_p7, %p808_p4 }
  0x5d   : > { %662 = vmatprep.subr.bf16.mxu1 %v878_v1 }
  0x5e   : > { %640 = vmatpush3.bf16.msra.mxu0 %v639_v23  ;;  %p811_p11 = pnand %p810_p8, %p804_p3 }
  0x5f   : > { %641 = vmatprep.subr.bf16.mxu0 %v878_v1 }
  0x60   : > { %664 = vmatpush3.bf16.msra.mxu1 %v663_v32 }
  0x61   : > { %665 = vmatprep.subr.bf16.mxu1 %v878_v1 }
  0x62   : > { %643 = vmatpush3.bf16.msra.mxu0 %v642_v29 }
  0x63   : > { %644 = vmatprep.subr.bf16.mxu0 %v878_v1 }
  0x64   : > { %667 = vmatpush3.bf16.msra.mxu1 %v666_v38 }
  0x65   : > { %668 = vmatprep.subr.bf16.mxu1 %v878_v1 }
  0x66   : > { %646 = vmatpush3.bf16.msra.mxu0 %v645_v35 }
  0x67   : > { %647 = vmatprep.subr.bf16.mxu0 %v878_v1 }
  0x68   : > { %670 = vmatpush3.bf16.msra.mxu1 %v669_v44 }
  0x69   : > { %671 = vmatprep.subr.bf16.mxu1 %v878_v1 }
  0x6a   : > { %649 = vmatpush3.bf16.msra.mxu0 %v648_v41 }
  0x6b   : > { %650 = vmatprep.subr.bf16.mxu0 %v878_v1 }
  0x6c   : > { %673 = vmatpush3.bf16.msra.mxu1 %v672_v48 }
  0x6d   : > { %674 = vmatprep.subr.bf16.mxu1 %v878_v1 }
  0x6e   : > { %652 = vmatpush3.bf16.msra.mxu0 %v651_v47 }
  0x70   : > { %676 = vmatpush3.bf16.msra.mxu1 %v675_v55 }
  0xd4   : > { %v228_v51 = vpop.permute.xlu0 %227 }
  0xd5   : > { %vm229_vm1 = vcmp.eq.s32.totalorder %v228_v51, %v225_v50 }
  0xd6   : > { %592 = vmatmul.mubr.msk.f32.vlgmr.msra.gmra.mrb[0].mxu0 %vm229_vm1, %v881_v52 }
 0x1a9   : > { %v314_v56 = vpop.f32.mrb[0].mxu0 }
 0x1aa   : > { %v318_v57 = vmax.f32 %v314_v56, 0.0  ;;  %v593_v58 = vpop.f32.mrb[1].mxu0 }
 0x1ac   : > { %627 = vmatmul.mubr.f32.vlgmr.msra.gmra.mrb[0].mxu1 %v318_v57 }
 0x27f   : > { %v408_v60 = vpop.f32.mrb[0].mxu1 }
 0x280   : > { %v409_v61 = vadd.f32 %v520_v59, %v408_v60  ;;  %v628_v62 = vpop.f32.mrb[1].mxu1 }
 0x282   : > { %412 = vst [vmem:[%s218_s9] sm:$0xff] %v409_v61 }
 0x283   : > { %814 = shalt.err (!%p811_p11)
}
 0x284   : > { %s815_s6 = scalar_lea.hbm %s1057_s29, 128  ;;  %s819_s23 = scalar_lea.hbm %s1103_s4, 256 }
 0x285   : > { %p816_p13 = scmp.ne.s32.totalorder %s1057_s29, %s815_s6  ;;  %p820_p6 = scmp.lt.u32.totalorder %s1057_s29, %s1103_s4 }
 0x286   : > { %p821_p9 = scmp.lt.u32.totalorder %s819_s23, %s815_s6  ;;  %p823_p12 = scmp.lt.u32.totalorder %s815_s6, %s1057_s29 }
 0x287   : > { %p817_p5 = pnand %p816_p13, %p1116_p1 }
 0x288   : > { %p822_p10 = por %p821_p9, %p820_p6 }
 0x289   : > { %p818_p0 = pneg %p817_p5 }
 0x28a   : > { %p824_p2 = por %p823_p12, %p822_p10 }
 0x28c   : > { %p825_p3 = pnand %p824_p2, %p818_p0 }
 0x28e   : > { %828 = shalt.err (!%p825_p3)
}
 0x28f   : > { %685 = dma.vmem_to_hbm [thread:$0]  (%p1116_p1), %s1059_s10, 128, %s1057_s29, %s414_s13  }
 0x290 PF: > { %p702_p4 = scmp.ge.s32.totalorder %s871_s18, 2  ;;  %s439_s7 = sand.u32 1, %s859_s15  }
 0x291   : > { %p1117_p7 = scmp.ne.s32.totalorder %s1108_s26, 0  ;;  %s440_s8 = scalar_lea.sflag [#allocation4], %s439_s7 }
 0x293   : > { %p695_p8 = pnand %p702_p4, %p1117_p7 }
 0x295   : > { %854 = dma.done.wait (!%p695_p8), %s440_s8, 128  }
 0x296   : > { %856 = vsyncadd (!%p695_p8), %s440_s8, 4294967168  ;;  %p16_p11 = scmp.ge.s32.totalorder %s933_s21, 4   ;;  %s1118_s15 = smov %s863_s16 }
 0x297   : > { %s1119_s16 = smov %s867_s17  ;;  %s1120_s17 = smov %s944_s24 }
 0x298   : > { %s1121_s18 = smov %s933_s21  ;;  %18 = sbr.rel (!%p16_p11) target bundleno = 5 (0x5), region = 80 }
 0x29f   :  { %445 = vsyncpa [#allocation3], 1 }
 0x2a0   :  { %447 = vsyncpa [#allocation3 + $0x1], 1 }
 0x2a1   :  { %448 = vsyncpa [#allocation6], 1 }
 0x2a2   :  { %449 = vsyncpa [#allocation4], 1 }
 0x2a3   :  { %451 = vsyncpa [#allocation4 + $0x1], 1 }

</bundles_post_ra>
